<compile_context>
chip_gen: v7x
topology: tpu7x:2x2x1
jax: 0.10.0
libtpu: 0.0.40
codegen_flags: <defaults>
</compile_context>

<pallas_src>
import jax
import jax.numpy as jnp
from jax.experimental import pallas as pl
from jax.experimental.pallas import tpu as pltpu


_SQRT_2_OVER_PI = 0.7978845608028654


def _gelu_new(x):
    # GPT-2 "gelu_new": 0.5*x*(1+tanh(sqrt(2/pi)*(x + 0.044715*x^3)))
    return 0.5 * x * (1.0 + jnp.tanh(_SQRT_2_OVER_PI * (x + 0.044715 * x * x * x)))


def _round_up(a, b):
    return ((a + b - 1) // b) * b


def gpt2_mlp_kernel(x_ref, wfc_ref, bfc_ref, wproj_ref, bproj_ref, o_ref, acc_ref):
    k = pl.program_id(1)

    @pl.when(k == 0)
    def _():
        acc_ref[...] = jnp.zeros_like(acc_ref)

    # First linear, k-chunk: (tm, nx) @ (nx, tk) -> (tm, tk), f32 accumulation.
    h = jnp.dot(x_ref[...], wfc_ref[...], preferred_element_type=jnp.float32)
    # Bias + gelu in f32 (EUP tanh), regardless of operand dtype.
    h = _gelu_new(h + bfc_ref[...].astype(jnp.float32))
    # Second linear, same k-chunk: (tm, tk) @ (tk, nx) -> partial (tm, nx).
    acc_ref[...] += jnp.dot(h.astype(wproj_ref.dtype), wproj_ref[...],
                            preferred_element_type=jnp.float32)

    @pl.when(k == pl.num_programs(1) - 1)
    def _():
        # b_proj added exactly once, after the full n_state reduction.
        o_ref[...] = (acc_ref[...] + bproj_ref[...].astype(jnp.float32)).astype(o_ref.dtype)
        # TODO(synk): training-mode dropout (resid_pdrop) not applied; eval identity.


def _tpu_params():
    """Best-effort per-core VMEM capacity + device-kind string."""
    vmem_cap = 64 * 1024 * 1024  # safe fallback (v7x-sized)
    try:
        info = pltpu.get_tpu_info()
        cap = getattr(info, "vmem_capacity_bytes", None)
        if cap:
            vmem_cap = int(cap)
    except Exception:
        pass
    kind = ""
    try:
        kind = jax.devices()[0].device_kind.lower()
    except Exception:
        pass
    return vmem_cap, kind


def _vmem_need(tm, tk, nx, w_isize, x_isize, o_isize):
    """Conservative VMEM estimate for one grid step (double-buffered blocks)."""
    nbuf = 2
    x_b = nbuf * tm * nx * x_isize            # x row tile
    o_b = nbuf * tm * nx * o_isize            # output row tile
    acc_b = tm * nx * 4                       # f32 accumulator scratch
    w_b = nbuf * (nx * tk + tk * nx) * w_isize  # W_fc + W_proj chunks
    b_b = nbuf * tk * 4 + nx * 4              # b_fc chunk + resident b_proj (f32)
    inter_b = tm * tk * (4 + w_isize)         # f32 gelu tile + cast copy for 2nd matmul
    return x_b + o_b + acc_b + w_b + b_b + inter_b


def _largest_divisor_tile(n, unit=128, cap=2048):
    """Largest multiple of `unit` that divides n exactly and is <= cap."""
    t = min(cap, (n // unit) * unit)
    while t >= unit:
        if n % t == 0:
            return t
        t -= unit
    return None


def gpt2_mlp(x, w_fc, b_fc, w_proj, b_proj, *, tm=None, tk=None,
             compute_dtype=jnp.bfloat16):
    """Fused GPT2MLP forward.

    x: [B, S, nx]; w_fc: [nx, n_state]; b_fc: [n_state];
    w_proj: [n_state, nx]; b_proj: [nx].
    compute_dtype: MXU operand dtype for x / weights (default bf16);
                   pass None (or jnp.float32) to keep exact f32 operands.
    """
    B, S, nx = x.shape
    n_state = w_fc.shape[1]
    M = B * S
    out_dtype = x.dtype

    if compute_dtype is not None:
        x = x.astype(compute_dtype)
        w_fc = w_fc.astype(compute_dtype)
        w_proj = w_proj.astype(compute_dtype)
    # TODO(synk): on v7x, optionally stream W_fc/W_proj as fp8 (native fp8 MXU)
    # to halve weight DMA again — not applied here to preserve bf16 numerics.

    x_isize = jnp.dtype(x.dtype).itemsize
    w_isize = jnp.dtype(w_fc.dtype).itemsize
    o_isize = jnp.dtype(out_dtype).itemsize

    vmem_cap, kind = _tpu_params()
    # Generation-aware VMEM budget: ~80% of physical per-core capacity
    # (~102 MiB on 128 MiB v5e/v6e, ~51 MiB on 64 MiB v7x), leaving headroom
    # for compiler-internal scratch.
    budget = int(0.8 * vmem_cap)
    soft = int(0.85 * budget)

    two_tc = ("v7" in kind) or (vmem_cap <= 64 * 1024 * 1024)
    if "v5" in kind:
        tm_target = 256    # v5e: already near its ~240 FLOP/B balance point
    elif two_tc:
        tm_target = 512    # v7x: smaller VMEM; keep >=2 row tiles for both TCs
    else:
        tm_target = 1024   # v6e: weight-streaming roofline needs ~650 FLOP/B

    if tm is None:
        tm = min(tm_target, _round_up(M, 8))
        if two_tc and M >= 512 and -(-M // tm) < 2:
            # Ensure the 'parallel' M axis has >= 2 tiles so both TCs get work.
            tm = _round_up(-(-M // 2), 8)

    # n_state (reduction) tiling: keep weights fully VMEM-resident when they fit
    # (1x weight DMA total), otherwise stream a k-chunk that divides n_state
    # exactly so no wrapper-side weight padding/copy is needed.
    pad_k = False
    if tk is None:
        if _vmem_need(tm, n_state, nx, w_isize, x_isize, o_isize) <= soft:
            tk = n_state
        else:
            tk = _largest_divisor_tile(n_state)
            if tk is None:
                tk = min(512, _round_up(n_state, 128))
                pad_k = True
    else:
        pad_k = (n_state % tk) != 0

    # Shrink the row tile if the tile set overflows the VMEM budget.
    while tm > 8 and _vmem_need(tm, tk, nx, w_isize, x_isize, o_isize) > soft:
        tm = max(8, (tm // 2) // 8 * 8)

    Mp = _round_up(M, tm)
    Kp = _round_up(n_state, tk) if pad_k else n_state

    x2 = x.reshape(M, nx)
    if Mp != M:
        x2 = jnp.pad(x2, ((0, Mp - M), (0, 0)))
    if pad_k and Kp != n_state:
        # Exact: gelu(0 + 0) == 0 and padded W_proj rows are zero.
        w_fc = jnp.pad(w_fc, ((0, 0), (0, Kp - n_state)))
        b_fc = jnp.pad(b_fc, (0, Kp - n_state))
        w_proj = jnp.pad(w_proj, ((0, Kp - n_state), (0, 0)))

    m_tiles = Mp // tm
    k_tiles = Kp // tk
    grid = (m_tiles, k_tiles)

    # Weights are re-streamed once per row tile only when the k axis is tiled;
    # fully-resident weights (k_tiles == 1, constant block index) are DMA'd once.
    w_passes = m_tiles if k_tiles > 1 else 1
    cost = pl.CostEstimate(
        flops=4 * M * nx * n_state,          # two matmuls, 2*M*nx*n_state each
        transcendentals=M * n_state,          # one tanh per hidden activation
        bytes_accessed=int(
            x2.size * x_isize + Mp * nx * o_isize
            + w_passes * (w_fc.size * w_isize + w_proj.size * w_isize + b_fc.size * 4)
            + b_proj.size * 4),
    )

    out = pl.pallas_call(
        gpt2_mlp_kernel,
        out_shape=jax.ShapeDtypeStruct((Mp, nx), out_dtype),
        grid_spec=pltpu.PrefetchScalarGridSpec(
            num_scalar_prefetch=0,
            grid=grid,
            in_specs=[
                pl.BlockSpec((tm, nx), lambda i, k: (i, 0)),   # x row tile
                pl.BlockSpec((nx, tk), lambda i, k: (0, k)),   # W_fc k-chunk
                pl.BlockSpec((1, tk), lambda i, k: (0, k)),    # b_fc k-chunk
                pl.BlockSpec((tk, nx), lambda i, k: (k, 0)),   # W_proj k-chunk
                pl.BlockSpec((1, nx), lambda i, k: (0, 0)),    # b_proj (tiny, resident)
            ],
            out_specs=pl.BlockSpec((tm, nx), lambda i, k: (i, 0)),
            scratch_shapes=[pltpu.VMEM((tm, nx), jnp.float32)],
        ),
        compiler_params=pltpu.CompilerParams(
            dimension_semantics=("parallel", "arbitrary"),
            vmem_limit_bytes=budget,
        ),
        cost_estimate=cost,
    )(x2, w_fc, b_fc.reshape(1, Kp).astype(jnp.float32),
      w_proj, b_proj.reshape(1, nx).astype(jnp.float32))

    return out[:M].reshape(B, S, nx)


def _reference(x, w_fc, b_fc, w_proj, b_proj):
    h = _gelu_new(jnp.einsum("bsd,df->bsf", x, w_fc) + b_fc)
    return jnp.einsum("bsf,fd->bsd", h, w_proj) + b_proj


if __name__ == "__main__":
    # Small shapes consistent with GPT2MLP: n_state = 4 * hidden.
    # S=9 exercises row-tile padding; the explicit tm=8/tk=128 run exercises the
    # streamed k-reduction accumulator path (grid = (3, 2)).
    B, S, nx = 2, 9, 64
    n_state = 4 * nx  # 256

    key = jax.random.PRNGKey(0)
    kx, kw1, kw2, kb1, kb2 = jax.random.split(key, 5)

    x = jax.random.normal(kx, (B, S, nx), dtype=jnp.float32)
    # Deterministic xavier-normal-style init (synthetic, not a checkpoint).
    w_fc = jax.random.normal(kw1, (nx, n_state), dtype=jnp.float32) * (2.0 / (nx + n_state)) ** 0.5
    b_fc = jax.random.normal(kb1, (n_state,), dtype=jnp.float32) * 0.1
    w_proj = jax.random.normal(kw2, (n_state, nx), dtype=jnp.float32) * (2.0 / (nx + n_state)) ** 0.5
    b_proj = jax.random.normal(kb2, (nx,), dtype=jnp.float32) * 0.1

    ref = _reference(x, w_fc, b_fc, w_proj, b_proj)

    # 1) Exact f32-operand path, auto tile selection (resident weights, k_tiles=1).
    out_f32 = gpt2_mlp(x, w_fc, b_fc, w_proj, b_proj, compute_dtype=jnp.float32)
    jax.block_until_ready(out_f32)
    assert out_f32.shape == (B, S, nx)
    assert jnp.allclose(out_f32, ref, atol=1e-5, rtol=1e-5)

    # 2) Exact f32-operand path, forced streamed k-reduction (grid = (3, 2)).
    out_stream = gpt2_mlp(x, w_fc, b_fc, w_proj, b_proj, tm=8, tk=128,
                          compute_dtype=jnp.float32)
    jax.block_until_ready(out_stream)
    assert jnp.allclose(out_stream, ref, atol=1e-5, rtol=1e-5)

    # 3) Default bf16 MXU-operand path (f32 accumulation + f32 gelu).
    out_bf16 = gpt2_mlp(x, w_fc, b_fc, w_proj, b_proj)
    jax.block_until_ready(out_bf16)
    assert jnp.allclose(out_bf16, ref, atol=2e-2, rtol=2e-2)

    print("KERNEL_OK")
</pallas_src>

<mosaic_0001>
module attributes {stable_mosaic.version = 11 : i64} {
  func.func @gpt2_mlp_kernel(%arg0: i32, %arg1: i32, %arg2: memref<24x64xf32, #tpu.memory_space<vmem>>, %arg3: memref<64x256xf32, #tpu.memory_space<vmem>>, %arg4: memref<1x256xf32, #tpu.memory_space<vmem>>, %arg5: memref<256x64xf32, #tpu.memory_space<vmem>>, %arg6: memref<1x64xf32, #tpu.memory_space<vmem>>, %arg7: memref<24x64xf32, #tpu.memory_space<vmem>>, %arg8: memref<24x64xf32, #tpu.memory_space<vmem>>) attributes {dimension_semantics = [#tpu.dimension_semantics<parallel>, #tpu.dimension_semantics<arbitrary>], iteration_bounds = array<i64: 1, 1>, scalar_prefetch = 0 : i64, scratch_operands = 1 : i64, tpu.core_type = #tpu.core_type<tc>, window_params = [{transform_indices = @transform_0, window_bounds = array<i64: 24, 64>}, {transform_indices = @transform_1, window_bounds = array<i64: 64, 256>}, {transform_indices = @transform_2, window_bounds = array<i64: 1, 256>}, {transform_indices = @transform_3, window_bounds = array<i64: 256, 64>}, {pipeline_mode = #tpu.pipeline_mode<synchronous>, transform_indices = @transform_4, window_bounds = array<i64: 1, 64>}, {transform_indices = @transform_5, window_bounds = array<i64: 24, 64>}]} {
    %c0_i32 = arith.constant 0 : i32
    %0 = arith.cmpi eq, %arg1, %c0_i32 : i32
    %1 = arith.extui %0 : i1 to i32
    %c0_i32_0 = arith.constant 0 : i32
    %2 = arith.cmpi ne, %1, %c0_i32_0 : i32
    scf.if %2 {
      %cst_19 = arith.constant 0.000000e+00 : f32
      %30 = vector.broadcast %cst_19 : f32 to vector<24x64xf32>
      %c0_20 = arith.constant 0 : index
      %c0_21 = arith.constant 0 : index
      %31 = vector.load %arg8[%c0_20, %c0_21] : memref<24x64xf32, #tpu.memory_space<vmem>>, vector<24x64xf32>
      tpu.vector_store %arg8[%c0_20, %c0_21], %30 {strides = array<i32>} : memref<24x64xf32, #tpu.memory_space<vmem>>, vector<24x64xf32>,
    } else {
    }
    %c0 = arith.constant 0 : index
    %c0_1 = arith.constant 0 : index
    %3 = vector.load %arg2[%c0, %c0_1] : memref<24x64xf32, #tpu.memory_space<vmem>>, vector<24x64xf32>
    %c0_2 = arith.constant 0 : index
    %c0_3 = arith.constant 0 : index
    %4 = vector.load %arg3[%c0_2, %c0_3] : memref<64x256xf32, #tpu.memory_space<vmem>>, vector<64x256xf32>
    %cst = arith.constant dense<0.000000e+00> : vector<24x256xf32>
    %5 = tpu.matmul %3, %4, %cst {dimension_numbers = #tpu.dot_dimension_numbers<[1], [0], [0], [1], [0, 0, 1, 1], [], []>} : vector<24x64xf32>, vector<64x256xf32>, vector<24x256xf32> -> vector<24x256xf32>
    %c0_4 = arith.constant 0 : index
    %c0_5 = arith.constant 0 : index
    %6 = vector.load %arg4[%c0_4, %c0_5] : memref<1x256xf32, #tpu.memory_space<vmem>>, vector<1x256xf32>
    %7 = vector.broadcast %6 : vector<1x256xf32> to vector<24x256xf32>
    %8 = arith.addf %5, %7 : vector<24x256xf32>
    %cst_6 = arith.constant 5.000000e-01 : f32
    %9 = vector.broadcast %cst_6 : f32 to vector<24x256xf32>
    %10 = arith.mulf %9, %8 : vector<24x256xf32>
    %cst_7 = arith.constant 4.471500e-02 : f32
    %11 = vector.broadcast %cst_7 : f32 to vector<24x256xf32>
    %12 = arith.mulf %11, %8 : vector<24x256xf32>
    %13 = arith.mulf %12, %8 : vector<24x256xf32>
    %14 = arith.mulf %13, %8 : vector<24x256xf32>
    %15 = arith.addf %8, %14 : vector<24x256xf32>
    %cst_8 = arith.constant 0.797884583 : f32
    %16 = vector.broadcast %cst_8 : f32 to vector<24x256xf32>
    %17 = arith.mulf %16, %15 : vector<24x256xf32>
    %18 = math.tanh %17 : vector<24x256xf32>
    %cst_9 = arith.constant 1.000000e+00 : f32
    %19 = vector.broadcast %cst_9 : f32 to vector<24x256xf32>
    %20 = arith.addf %19, %18 : vector<24x256xf32>
    %21 = arith.mulf %10, %20 : vector<24x256xf32>
    %c0_10 = arith.constant 0 : index
    %c0_11 = arith.constant 0 : index
    %22 = vector.load %arg8[%c0_10, %c0_11] : memref<24x64xf32, #tpu.memory_space<vmem>>, vector<24x64xf32>
    %c0_12 = arith.constant 0 : index
    %c0_13 = arith.constant 0 : index
    %23 = vector.load %arg5[%c0_12, %c0_13] : memref<256x64xf32, #tpu.memory_space<vmem>>, vector<256x64xf32>
    %cst_14 = arith.constant dense<0.000000e+00> : vector<24x64xf32>
    %24 = tpu.matmul %21, %23, %cst_14 {dimension_numbers = #tpu.dot_dimension_numbers<[1], [0], [0], [1], [0, 0, 1, 1], [], []>} : vector<24x256xf32>, vector<256x64xf32>, vector<24x64xf32> -> vector<24x64xf32>
    %25 = arith.addf %22, %24 : vector<24x64xf32>
    %c0_15 = arith.constant 0 : index
    %c0_16 = arith.constant 0 : index
    %26 = vector.load %arg8[%c0_15, %c0_16] : memref<24x64xf32, #tpu.memory_space<vmem>>, vector<24x64xf32>
    tpu.vector_store %arg8[%c0_15, %c0_16], %25 {strides = array<i32>} : memref<24x64xf32, #tpu.memory_space<vmem>>, vector<24x64xf32>,
    %c0_i32_17 = arith.constant 0 : i32
    %27 = arith.cmpi eq, %arg1, %c0_i32_17 : i32
    %28 = arith.extui %27 : i1 to i32
    %c0_i32_18 = arith.constant 0 : i32
    %29 = arith.cmpi ne, %28, %c0_i32_18 : i32
    scf.if %29 {
      %c0_19 = arith.constant 0 : index
      %c0_20 = arith.constant 0 : index
      %30 = vector.load %arg8[%c0_19, %c0_20] : memref<24x64xf32, #tpu.memory_space<vmem>>, vector<24x64xf32>
      %c0_21 = arith.constant 0 : index
      %c0_22 = arith.constant 0 : index
      %31 = vector.load %arg6[%c0_21, %c0_22] : memref<1x64xf32, #tpu.memory_space<vmem>>, vector<1x64xf32>
      %32 = vector.broadcast %31 : vector<1x64xf32> to vector<24x64xf32>
      %33 = arith.addf %30, %32 : vector<24x64xf32>
      %c0_23 = arith.constant 0 : index
      %c0_24 = arith.constant 0 : index
      %34 = vector.load %arg7[%c0_23, %c0_24] : memref<24x64xf32, #tpu.memory_space<vmem>>, vector<24x64xf32>
      tpu.vector_store %arg7[%c0_23, %c0_24], %33 {strides = array<i32>} : memref<24x64xf32, #tpu.memory_space<vmem>>, vector<24x64xf32>,
    } else {
    }
    return
  }
  func.func @transform_0(%arg0: i32, %arg1: i32) -> (i32, i32) {
    %c0_i32 = arith.constant 0 : i32
    %c0_i32_0 = arith.constant 0 : i32
    return %arg0, %c0_i32 : i32, i32
  }
  func.func @transform_1(%arg0: i32, %arg1: i32) -> (i32, i32) {
    %c0_i32 = arith.constant 0 : i32
    %c0_i32_0 = arith.constant 0 : i32
    return %c0_i32, %arg1 : i32, i32
  }
  func.func @transform_2(%arg0: i32, %arg1: i32) -> (i32, i32) {
    %c0_i32 = arith.constant 0 : i32
    %c0_i32_0 = arith.constant 0 : i32
    return %c0_i32, %arg1 : i32, i32
  }
  func.func @transform_3(%arg0: i32, %arg1: i32) -> (i32, i32) {
    %c0_i32 = arith.constant 0 : i32
    %c0_i32_0 = arith.constant 0 : i32
    return %arg1, %c0_i32 : i32, i32
  }
  func.func @transform_4(%arg0: i32, %arg1: i32) -> (i32, i32) {
    %c0_i32 = arith.constant 0 : i32
    %c0_i32_0 = arith.constant 0 : i32
    %c0_i32_1 = arith.constant 0 : i32
    return %c0_i32, %c0_i32_0 : i32, i32
  }
  func.func @transform_5(%arg0: i32, %arg1: i32) -> (i32, i32) {
    %c0_i32 = arith.constant 0 : i32
    %c0_i32_0 = arith.constant 0 : i32
    return %arg0, %c0_i32 : i32, i32
  }
}

</mosaic_0001>

<bundles_post_ra>
// kernel: tpu_custom_call.1
= control target key start
LH: loop header
LB: loop body
LE: loop exit
PB: predicated region body
PF: predicated region fallthrough
CT: control target
= control target key end

     0   :  { %vm25_vm0 = vcmask 523264   ;;  %v496_v7 = vmov 0.0   ;;  %s713_s0 = inlined_call_operand.vmem [shape: f32[24,64], index: 0, kind: input, shape index: {}]   ;;  %s714_s1 = inlined_call_operand.vmem [shape: f32[64,256], index: 1, kind: input, shape index: {}]   ;;  %s715_s2 = inlined_call_operand.vmem [shape: f32[1,256], index: 2, kind: input, shape index: {}]   ;;  %s716_s3 = inlined_call_operand.vmem [shape: f32[256,64], index: 3, kind: input, shape index: {}]   ;;  %s717_s4 = inlined_call_operand.vmem [shape: f32[1,64], index: 4, kind: input, shape index: {}]   ;;  %s718_s5 = inlined_call_operand.hbm [shape: f32[24,64], index: 5, kind: output, shape index: {}]  }
   0x1   :  { %v33_v0 = vld [vmem:[%s714_s1 + $0x8] sm:$0xff]  ;;  %v35_v1 = vld [vmem:[%s714_s1 + $0x18] sm:$0xff]  ;;  %v32_v2 = vld [vmem:[%s714_s1] sm:$0xff]  ;;  %134 = vmatprep.mubr.f32.mxu0 %v496_v7  ;;  %26 = vst.msk [vmem:[#allocation2] sm:$0xff] %vm25_vm0, %v496_v7 }
   0x2   :  { %v408_v3 = vpack.c.bf16 %v35_v1, %v33_v0  ;;  %v34_v4 = vld [vmem:[%s714_s1 + $0x10] sm:$0xff]  ;;  %v37_v5 = vld [vmem:[%s714_s1 + $0x28] sm:$0xff]  ;;  %v39_v6 = vld [vmem:[%s714_s1 + $0x38] sm:$0xff]  ;;  %27 = vst.msk [vmem:[#allocation2 + $0x8] sm:$0xff] %vm25_vm0, %v496_v7 }
   0x3   :  { %28 = vst.msk [vmem:[#allocation2 + $0x10] sm:$0xff] %vm25_vm0, %v496_v7  ;;  %v410_v8 = vpack.c.bf16 %v34_v4, %v32_v2  ;;  %v412_v9 = vpack.c.bf16 %v39_v6, %v37_v5  ;;  %v36_v10 = vld [vmem:[%s714_s1 + $0x20] sm:$0xff]  ;;  %v38_v11 = vld [vmem:[%s714_s1 + $0x30] sm:$0xff]  ;;  %v41_v12 = vld [vmem:[%s714_s1 + $0x48] sm:$0xff] }
   0x4   :  { %409 = vmatprep.subr.bf16.mxu0 %v408_v3  ;;  %v43_v13 = vld [vmem:[%s714_s1 + $0x58] sm:$0xff]  ;;  %v414_v14 = vpack.c.bf16 %v38_v11, %v36_v10  ;;  %v40_v16 = vld [vmem:[%s714_s1 + $0x40] sm:$0xff]  ;;  %v42_v17 = vld [vmem:[%s714_s1 + $0x50] sm:$0xff] }
   0x5   :  { %411 = vmatpush1.bf16.msra.mxu0 %v410_v8  ;;  %v416_v15 = vpack.c.bf16 %v43_v13, %v41_v12  ;;  %v45_v18 = vld [vmem:[%s714_s1 + $0x68] sm:$0xff]  ;;  %v47_v19 = vld [vmem:[%s714_s1 + $0x78] sm:$0xff]  ;;  %v226_v20 = vld [vmem:[%s716_s3 + $0x80] sm:$0xff]  ;;  %v418_v25 = vpack.c.bf16 %v42_v17, %v40_v16 }
   0x6   :  { %413 = vmatprep.subr.bf16.mxu0 %v412_v9  ;;  %v227_v21 = vld [vmem:[%s716_s3 + $0x88] sm:$0xff]  ;;  %v210_v23 = vld [vmem:[%s716_s3] sm:$0xff] }
   0x7   :  { %v424_v22 = vpack.c.bf16 %v227_v21, %v226_v20  ;;  %v211_v24 = vld [vmem:[%s716_s3 + $0x8] sm:$0xff] }
   0x8   :  { %v426_v26 = vpack.c.bf16 %v211_v24, %v210_v23 }
   0x9   :  { %415 = vmatpush1.bf16.msra.mxu0 %v414_v14 }
   0xa   :  { %10 = vsyncpa [#allocation4], 0  ;;  %417 = vmatprep.subr.bf16.mxu0 %v416_v15  ;;  %v420_v27 = vpack.c.bf16 %v47_v19, %v45_v18  ;;  %v44_v28 = vld [vmem:[%s714_s1 + $0x60] sm:$0xff]  ;;  %v46_v29 = vld [vmem:[%s714_s1 + $0x70] sm:$0xff]  ;;  %425 = vmatprep.subr.bf16.mxu1 %v424_v22  ;;  %v50_v12 = vlaneseq  ;;  %s497_s17 = smov [#allocation3]  }
   0xb   :  { %427 = vmatpush3.bf16.msra.mxu1 %v426_v26  ;;  %v422_v30 = vpack.c.bf16 %v46_v29, %v44_v28  ;;  %v29_v31 = vld [vmem:[%s713_s0] sm:$0xff]  ;;  %v30_v32 = vld [vmem:[%s713_s0 + $0x8] sm:$0xff]  ;;  %v31_v33 = vld [vmem:[%s713_s0 + $0x10] sm:$0xff]  ;;  %s352_s18 = sshll.u32 %s497_s17, 4  ;;  %s353_s18 = int_to_ptr.vmem [resolvable:$true] %s352_s18 }
   0xc   :  { %v228_v34 = vld [vmem:[%s716_s3 + $0x90] sm:$0xff]  ;;  %v229_v35 = vld [vmem:[%s716_s3 + $0x98] sm:$0xff]  ;;  %v230_v40 = vld [vmem:[%s716_s3 + $0xa0] sm:$0xff]  ;;  %v51_v13 = vshrl.u32 %v50_v12, 7  ;;  %s472_s19 = scalar_lea.vmem %s353_s18, 384  ;;  %p477_p1 = scmp.lt.s32.totalorder %s353_s18, %s353_s18 }
   0xd   :  { %419 = vmatpush1.bf16.msra.mxu0 %v418_v25  ;;  %v428_v36 = vpack.c.bf16 %v229_v35, %v228_v34  ;;  %v212_v37 = vld [vmem:[%s716_s3 + $0x10] sm:$0xff]  ;;  %v213_v38 = vld [vmem:[%s716_s3 + $0x18] sm:$0xff]  ;;  %v231_v41 = vld [vmem:[%s716_s3 + $0xa8] sm:$0xff]  ;;  %p473_p0 = scmp.ne.s32.totalorder %s353_s18, %s472_s19  ;;  %p478_p2 = scmp.lt.s32.totalorder %s472_s19, %s472_s19 }
   0xe   :  { %421 = vmatprep.subr.bf16.mxu0 %v420_v27  ;;  %v430_v39 = vpack.c.bf16 %v213_v38, %v212_v37  ;;  %v432_v42 = vpack.c.bf16 %v231_v41, %v230_v40  ;;  %v214_v43 = vld [vmem:[%s716_s3 + $0x20] sm:$0xff]  ;;  %v215_v44 = vld [vmem:[%s716_s3 + $0x28] sm:$0xff]  ;;  %v232_v46 = vld [vmem:[%s716_s3 + $0xb0] sm:$0xff]  ;;  %v52_v14 = vsub.s32 0, %v51_v13  ;;  %v56_v16 = vsub.s32 1, %v51_v13 }
   0xf   :  { %429 = vmatprep.subr.bf16.mxu1 %v428_v36  ;;  %v434_v45 = vpack.c.bf16 %v215_v44, %v214_v43  ;;  %v233_v47 = vld [vmem:[%s716_s3 + $0xb8] sm:$0xff]  ;;  %v216_v49 = vld [vmem:[%s716_s3 + $0x30] sm:$0xff]  ;;  %v234_v52 = vld [vmem:[%s716_s3 + $0xc0] sm:$0xff]  ;;  %p479_p3 = por %p478_p2, %p477_p1 }
  0x10   :  { %431 = vmatpush3.bf16.msra.mxu1 %v430_v39  ;;  %v436_v48 = vpack.c.bf16 %v233_v47, %v232_v46  ;;  %v217_v50 = vld [vmem:[%s716_s3 + $0x38] sm:$0xff]  ;;  %v235_v53 = vld [vmem:[%s716_s3 + $0xc8] sm:$0xff]  ;;  %v218_v55 = vld [vmem:[%s716_s3 + $0x40] sm:$0xff] }
  0x11   :  { %423 = vmatpush1.bf16.msra.mxu0 %v422_v30  ;;  %433 = vmatprep.subr.bf16.mxu1 %v432_v42  ;;  %v438_v51 = vpack.c.bf16 %v217_v50, %v216_v49  ;;  %v440_v54 = vpack.c.bf16 %v235_v53, %v234_v52  ;;  %v219_v56 = vld [vmem:[%s716_s3 + $0x48] sm:$0xff]  ;;  %v236_v58 = vld [vmem:[%s716_s3 + $0xd0] sm:$0xff]  ;;  %v237_v59 = vld [vmem:[%s716_s3 + $0xd8] sm:$0xff]  ;;  %p480_p4 = pnand %p479_p3, %p473_p0 }
  0x12   :  { %v442_v57 = vpack.c.bf16 %v219_v56, %v218_v55  ;;  %v220_v60 = vld [vmem:[%s716_s3 + $0x50] sm:$0xff]  ;;  %v444_v61 = vpack.c.bf16 %v237_v59, %v236_v58  ;;  %v221_v62 = vld [vmem:[%s716_s3 + $0x58] sm:$0xff]  ;;  %v238_v63 = vld [vmem:[%s716_s3 + $0xe0] sm:$0xff] }
  0x13   :  { %v239_v0 = vld [vmem:[%s716_s3 + $0xe8] sm:$0xff]  ;;  %v446_v1 = vpack.c.bf16 %v221_v62, %v220_v60  ;;  %v222_v3 = vld [vmem:[%s716_s3 + $0x60] sm:$0xff]  ;;  %v240_v5 = vld [vmem:[%s716_s3 + $0xf0] sm:$0xff] }
  0x14   :  { %363 = vmatmul.mubr.msk.f32.vlgmr.msra.gmra.mrb[0].mxu0 %vm25_vm0, %v29_v31  ;;  %435 = vmatpush3.bf16.msra.mxu1 %v434_v45  ;;  %v448_v2 = vpack.c.bf16 %v239_v0, %v238_v63  ;;  %v223_v4 = vld [vmem:[%s716_s3 + $0x68] sm:$0xff]  ;;  %v241_v6 = vld [vmem:[%s716_s3 + $0xf8] sm:$0xff]  ;;  %v224_v9 = vld [vmem:[%s716_s3 + $0x70] sm:$0xff] }
  0x15   :  { %140 = vmatprep.mubr.f32.mxu0 %v496_v7  ;;  %437 = vmatprep.subr.bf16.mxu1 %v436_v48  ;;  %v452_v8 = vpack.c.bf16 %v241_v6, %v240_v5  ;;  %v225_v10 = vld [vmem:[%s716_s3 + $0x78] sm:$0xff]  ;;  %v48_v15 = vld [vmem:[%s715_s2] sm:$0x3] }
  0x16   :  { %v454_v11 = vpack.c.bf16 %v225_v10, %v224_v9  ;;  %v53_v17 = vrot.slane %v48_v15, %v52_v14  ;;  %v57_v18 = vrot.slane %v48_v15, %v56_v16 }
  0x18   :  { %364 = vmatmul.mubr.msk.f32.gmra.mrb[2].mxu0 %vm25_vm0, %v30_v32  ;;  %439 = vmatpush3.bf16.msra.mxu1 %v438_v51 }
  0x19   :  { %146 = vmatprep.mubr.f32.mxu0 %v496_v7  ;;  %441 = vmatprep.subr.bf16.mxu1 %v440_v54  ;;  %v450_v7 = vpack.c.bf16 %v223_v4, %v222_v3 }
  0x1c   :  { %365 = vmatmul.mubr.msk.f32.gmra.mrb[4].mxu0 %vm25_vm0, %v31_v33  ;;  %443 = vmatpush3.bf16.msra.mxu1 %v442_v57 }
  0x1d   :  { %445 = vmatprep.subr.bf16.mxu1 %v444_v61 }
  0x20   :  { %447 = vmatpush3.bf16.msra.mxu1 %v446_v1 }
  0x21   :  { %449 = vmatprep.subr.bf16.mxu1 %v448_v2 }
  0x24   :  { %451 = vmatpush3.bf16.msra.mxu1 %v450_v7 }
  0x25   :  { %453 = vmatprep.subr.bf16.mxu1 %v452_v8 }
  0x28   :  { %455 = vmatpush3.bf16.msra.mxu1 %v454_v11 }
  0xe7   :  { %v136_v19 = vpop.f32.mrb[0].mxu0 }
  0xe8   :  { %v137_v20 = vadd.f32 %v136_v19, %v53_v17  ;;  %v138_v21 = vpop.f32.mrb[1].mxu0 }
  0xe9   :  { %v139_v22 = vadd.f32 %v138_v21, %v57_v18 }
  0xea   :  { %v159_v23 = vmul.f32 0.044715, %v137_v20  ;;  %v153_v2 = vmul.f32 0.5, %v137_v20 }
  0xeb   :  { %v142_v24 = vpop.f32.mrb[2].mxu0  ;;  %v160_v25 = vmul.f32 0.044715, %v139_v22  ;;  %v154_v0 = vmul.f32 0.5, %v139_v22 }
  0xec   :  { %v165_v26 = vmul.f32 %v159_v23, %v137_v20  ;;  %v143_v27 = vadd.f32 %v142_v24, %v53_v17  ;;  %v144_v28 = vpop.f32.mrb[3].mxu0 }
  0xed   :  { %v145_v29 = vadd.f32 %v144_v28, %v57_v18  ;;  %v166_v30 = vmul.f32 %v160_v25, %v139_v22 }
  0xee   :  { %v161_v31 = vmul.f32 0.044715, %v143_v27  ;;  %v171_v32 = vmul.f32 %v165_v26, %v137_v20  ;;  %v155_v10 = vmul.f32 0.5, %v143_v27 }
  0xef   :  { %v162_v33 = vmul.f32 0.044715, %v145_v29  ;;  %v148_v34 = vpop.f32.mrb[4].mxu0  ;;  %v172_v35 = vmul.f32 %v166_v30, %v139_v22  ;;  %v156_v8 = vmul.f32 0.5, %v145_v29 }
  0xf0   :  { %v167_v36 = vmul.f32 %v161_v31, %v143_v27  ;;  %v149_v37 = vadd.f32 %v148_v34, %v53_v17  ;;  %v150_v38 = vpop.f32.mrb[5].mxu0  ;;  %v177_v39 = vadd.f32 %v171_v32, %v137_v20  ;;  %v209_v32 = vld [vmem:[#allocation2 + $0x10] sm:$0xff] }
  0xf1   :  { %v168_v40 = vmul.f32 %v162_v33, %v145_v29  ;;  %v151_v41 = vadd.f32 %v150_v38, %v57_v18  ;;  %v178_v42 = vadd.f32 %v172_v35, %v139_v22  ;;  %v207_v22 = vld [vmem:[#allocation2] sm:$0xff] }
  0xf2   :  { %v163_v43 = vmul.f32 0.044715, %v149_v37  ;;  %v183_v44 = vmul.f32 0.7978846, %v177_v39  ;;  %v173_v45 = vmul.f32 %v167_v36, %v143_v27  ;;  %v157_v18 = vmul.f32 0.5, %v149_v37 }
  0xf3   :  { %v164_v46 = vmul.f32 0.044715, %v151_v41  ;;  %v184_v47 = vmul.f32 0.7978846, %v178_v42  ;;  %v174_v48 = vmul.f32 %v168_v40, %v145_v29  ;;  %v158_v16 = vmul.f32 0.5, %v151_v41 }
  0xf4   :  { %v169_v49 = vmul.f32 %v163_v43, %v149_v37  ;;  %460 = vtanh.f32 %v183_v44  ;;  %v179_v50 = vadd.f32 %v173_v45, %v143_v27  ;;  %v208_v27 = vld [vmem:[#allocation2 + $0x8] sm:$0xff]  ;;  %v366_v35 = vld [vmem:[%s717_s4] ss:$0 sm:$0xff] }
  0xf5   :  { %v170_v51 = vmul.f32 %v164_v46, %v151_v41  ;;  %462 = vtanh.f32 %v184_v47  ;;  %v180_v52 = vadd.f32 %v174_v48, %v145_v29 }
  0xf6   :  { %v185_v53 = vmul.f32 0.7978846, %v179_v50  ;;  %v175_v54 = vmul.f32 %v169_v49, %v149_v37 }
  0xf7   :  { %v186_v55 = vmul.f32 0.7978846, %v180_v52  ;;  %v176_v56 = vmul.f32 %v170_v51, %v151_v41 }
  0xf8   :  { %464 = vtanh.f32 %v185_v53  ;;  %v181_v57 = vadd.f32 %v175_v54, %v149_v37 }
  0xf9   :  { %466 = vtanh.f32 %v186_v55  ;;  %v182_v58 = vadd.f32 %v176_v56, %v151_v41 }
  0xfa   :  { %v187_v59 = vmul.f32 0.7978846, %v181_v57 }
  0xfb   :  { %v188_v60 = vmul.f32 0.7978846, %v182_v58 }
  0xfc   :  { %468 = vtanh.f32 %v187_v59 }
  0xfd   :  { %470 = vtanh.f32 %v188_v60 }
  0xfe   :  { %v461_v61 = vpop.eup %460 }
  0xff   :  { %v463_v62 = vpop.eup %462  ;;  %v195_v63 = vadd.f32 1.0, %v461_v61 }
 0x100   :  { %v196_v1 = vadd.f32 1.0, %v463_v62 }
 0x101   :  { %v201_v6 = vmul.f32 %v195_v63, %v153_v2 }
 0x102   :  { %v465_v3 = vpop.eup %464  ;;  %v202_v4 = vmul.f32 %v196_v1, %v154_v0 }
 0x103   :  { %v467_v5 = vpop.eup %466  ;;  %v197_v7 = vadd.f32 1.0, %v465_v3 }
 0x104   :  { %306 = vmatprep.mubr.f32.mxu1 %v202_v4  ;;  %v198_v9 = vadd.f32 1.0, %v467_v5 }
 0x105   :  { %307 = vmatmul.mubr.f32.vlgmr.msra.gmra.mrb[0].mxu1 %v201_v6  ;;  %v203_v14 = vmul.f32 %v197_v7, %v155_v10 }
 0x106   :  { %v469_v11 = vpop.eup %468  ;;  %v204_v12 = vmul.f32 %v198_v9, %v156_v8 }
 0x107   :  { %v471_v13 = vpop.eup %470  ;;  %v199_v15 = vadd.f32 1.0, %v469_v11 }
 0x108   :  { %311 = vmatprep.mubr.f32.mxu1 %v204_v12  ;;  %v200_v17 = vadd.f32 1.0, %v471_v13 }
 0x109   :  { %312 = vmatmul.mubr.f32.gmra.mrb[2].mxu1 %v203_v14  ;;  %v205_v20 = vmul.f32 %v199_v15, %v157_v18 }
 0x10a   :  { %v206_v19 = vmul.f32 %v200_v17, %v158_v16 }
 0x10c   :  { %316 = vmatprep.mubr.f32.mxu1 %v206_v19 }
 0x10d   :  { %317 = vmatmul.mubr.f32.gmra.mrb[4].mxu1 %v205_v20 }
 0x1d8   :  { %v399_v21 = vpop.f32.mrb[0].mxu1 }
 0x1d9   :  { %v400_v23 = vpop.f32.mrb[1].mxu1 }
 0x1da   :  { %v401_v24 = vadd.f32 %v400_v23, %v399_v21 }
 0x1dc   :  { %v322_v25 = vadd.f32 %v401_v24, %v207_v22  ;;  %v402_v26 = vpop.f32.mrb[2].mxu1 }
 0x1dd   :  { %v403_v28 = vpop.f32.mrb[3].mxu1 }
 0x1de   :  { %325 = vst.msk [vmem:[#allocation2] sm:$0xff] %vm25_vm0, %v322_v25  ;;  %v404_v29 = vadd.f32 %v403_v28, %v402_v26 }
 0x1e0   :  { %v323_v30 = vadd.f32 %v404_v29, %v208_v27  ;;  %v405_v31 = vpop.f32.mrb[4].mxu1 }
 0x1e1   :  { %v406_v33 = vpop.f32.mrb[5].mxu1 }
 0x1e2   :  { %326 = vst.msk [vmem:[#allocation2 + $0x8] sm:$0xff] %vm25_vm0, %v323_v30  ;;  %v407_v34 = vadd.f32 %v406_v33, %v405_v31 }
 0x1e4   :  { %v324_v36 = vadd.f32 %v407_v34, %v209_v32 }
 0x1e5   :  { %v331_v37 = vld [vmem:[#allocation2] sm:$0xff] }
 0x1e6   :  { %327 = vst.msk [vmem:[#allocation2 + $0x10] sm:$0xff] %vm25_vm0, %v324_v36  ;;  %v341_v38 = vadd.f32 %v366_v35, %v331_v37 }
 0x1e8   :  { %344 = vst.msk [vmem:[#allocation3] sm:$0xff] %vm25_vm0, %v341_v38 }
 0x1e9   :  { %v332_v39 = vld [vmem:[#allocation2 + $0x8] sm:$0xff] }
 0x1ea   :  { %v342_v40 = vadd.f32 %v366_v35, %v332_v39 }
 0x1ec   :  { %345 = vst.msk [vmem:[#allocation3 + $0x8] sm:$0xff] %vm25_vm0, %v342_v40 }
 0x1ed   :  { %v333_v41 = vld [vmem:[#allocation2 + $0x10] sm:$0xff] }
 0x1ee   :  { %v343_v42 = vadd.f32 %v366_v35, %v333_v41 }
 0x1f0   :  { %346 = vst.msk [vmem:[#allocation3 + $0x10] sm:$0xff] %vm25_vm0, %v343_v42 }
 0x1f1   :  { %483 = shalt.err (!%p480_p4)
}
 0x1f2   :  { %s484_s0 = scalar_lea.hbm %s718_s5, 384 }
 0x1f3   :  { %p485_p5 = scmp.ne.s32.totalorder %s718_s5, %s484_s0  ;;  %p488_p6 = scmp.lt.u32.totalorder %s484_s0, %s718_s5 }
 0x1f5   :  { %p490_p7 = pnand %p488_p6, %p485_p5 }
 0x1f7   :  { %493 = shalt.err (!%p490_p7)
}
 0x1f8   :  { %s498_s25 = smov 128   ;;  %s499_s26 = smov 8  }
 0x1f9   :  { %358 = dma.vmem_to_hbm [thread:$0]  %s353_s18, 384, %s718_s5, [#allocation4], %s498_s25, %s498_s25, %s499_s26  }
 0x1fa   :  { %494 = dma.done.wait [#allocation4], 384  }
 0x1fb   :  { %495 = vsyncadd [#allocation4], 4294966912 }
 0x1fc   :  { %362 = vsyncpa [#allocation4], 1 }

</bundles_post_ra>
